<compile_context>
chip_gen: v7x
topology: tpu7x:2x2x1
jax: 0.10.0
libtpu: 0.0.40
codegen_flags: <defaults>
</compile_context>

<pallas_src>
import jax
import jax.numpy as jnp
from jax.experimental import pallas as pl
from jax.experimental.pallas import tpu as pltpu

IEF_ITERS = 3
N_POSE = 24 * 6          # rot6d=True
N_SHAPE = 10
N_CAM = 3
N_STATE = N_POSE + N_SHAPE + N_CAM      # 157
STATE_PAD = 256                         # lane-dense packed state width
FC_IN = 2048             # resnet50 fc.in_features
HIDDEN = 1024

_VMEM_LIMIT = 32 * 1024 * 1024          # fits v5e/v6e/v7x scoped budgets


def _round_up(x, m):
    return -(-x // m) * m


# ----------------------------- Pallas kernels ------------------------------

def _backbone_kernel(x_ref, w_ref, b_ref, out_ref, acc_ref):
    # TODO(synk): full pretrained ResNet50 is not reproduced; stand-in is
    # global average pool + pointwise projection + ReLU -> (tb, 2048).
    # The 1/HW mean-pool scale is pre-folded into w_ref at param creation.
    h = pl.program_id(1)

    @pl.when(h == 0)
    def _():
        acc_ref[...] = jnp.zeros_like(acc_ref)

    # Partial spatial sum for this HW tile (zero-padded lanes contribute 0).
    acc_ref[...] += jnp.sum(x_ref[...], axis=-1)          # (tb, C_pad) f32

    @pl.when(h == pl.num_programs(1) - 1)
    def _():
        feat = jnp.dot(acc_ref[...], w_ref[...],
                       preferred_element_type=jnp.float32) + b_ref[...]
        out_ref[...] = jnp.maximum(feat, 0.0).astype(out_ref.dtype)  # bf16


def _ief_kernel(xf_ref, s0_ref,
                w1x_ref, b1_ref, w1s_ref,
                w2_ref, b2_ref,
                wh_ref, bh_ref,
                s_out_ref):
    f32 = jnp.float32
    bf16 = jnp.bfloat16
    tb = xf_ref.shape[0]

    xf = xf_ref[...]                                       # (tb, FC_IN) bf16
    # Hoisted: xf never changes across IEF iterations, so its fc1 column-block
    # contribution (the dominant 2048x1024 matmul, incl. b1) is computed once.
    h_xf = jnp.dot(xf, w1x_ref[...],
                   preferred_element_type=f32) + b1_ref[...]   # (tb, HIDDEN)

    # Hoist all loop-invariant loads out of the unrolled 3-iteration loop
    # (JAX does not CSE broadcast_in_dim / repeated ref reads).
    w1s = w1s_ref[...]
    w2 = w2_ref[...]
    b2 = b2_ref[...]
    wh = wh_ref[...]
    bh = bh_ref[...]

    # Packed initial state broadcast from a single (1, 256) row.
    s = jnp.broadcast_to(s0_ref[...], (tb, STATE_PAD)).astype(f32)

    for _ in range(IEF_ITERS):
        # fc1 over concat([xf, pose, shape, cam], 1) == h_xf + packed-state
        # column-block matmul (pad rows of w1s are zero).
        h = h_xf + jnp.dot(s.astype(bf16), w1s, preferred_element_type=f32)
        # drop1: identity (eval mode)
        h = jnp.dot(h.astype(bf16), w2, preferred_element_type=f32) + b2
        # drop2: identity (eval mode)
        # Fused output heads: one (HIDDEN, STATE_PAD) matmul produces the
        # packed [pose|shape|cam|pad] delta; residual add stays in f32.
        s = s + jnp.dot(h.astype(bf16), wh, preferred_element_type=f32) + bh

    s_out_ref[...] = s                                     # lane-dense (tb,256)


# ------------------------------ wrappers ------------------------------------

def _max_batch_tile():
    # v5e's MXU is 4x128^2: a 256-row M tile buys nothing there and doubles
    # per-tile VMEM; v6e/v7x (2x256^2 MXU) benefit from 256-row tiles.
    try:
        kind = jax.devices()[0].device_kind.lower()
        if "v5e" in kind or "v5 lite" in kind or "v5litepod" in kind:
            return 128
    except Exception:
        pass
    return 256


def _padded_batch(B):
    """Return (padded batch, batch tile). The tile is a multiple of 16 (bf16
    sublane packing), divides the padded batch, and for pb >= 32 the grid has
    at least 2 steps so v7x's second TensorCore is not idle."""
    max_tile = _max_batch_tile()
    if B < 32:
        pb = _round_up(B, 16)
        return pb, pb
    if B <= 2 * max_tile:
        pb = _round_up(B, 32)
        return pb, pb // 2
    pb = _round_up(B, max_tile)
    return pb, max_tile


def _backbone_hw_tile(tb, hw):
    """HW tile (multiple of 128) keeping one (tb, 8, hw_tile) f32 input
    buffer under ~4 MiB so the double-buffered stream fits easily."""
    hw128 = _round_up(hw, 128)
    budget = (4 * 1024 * 1024) // (tb * 8 * 4)
    cap = max(128, (budget // 128) * 128)
    return min(hw128, cap)


def backbone_standin(x3, w_bb, b_bb, tb, hw_tile):
    pb, c_pad, hw_pad = x3.shape
    n_hw = hw_pad // hw_tile
    return pl.pallas_call(
        _backbone_kernel,
        out_shape=jax.ShapeDtypeStruct((pb, FC_IN), jnp.bfloat16),
        grid=(pb // tb, n_hw),
        in_specs=[
            pl.BlockSpec((tb, c_pad, hw_tile), lambda i, h: (i, 0, h)),
            pl.BlockSpec((c_pad, FC_IN), lambda i, h: (0, 0),
                         pipeline_mode=pl.Buffered(1)),
            pl.BlockSpec((1, FC_IN), lambda i, h: (0, 0),
                         pipeline_mode=pl.Buffered(1)),
        ],
        out_specs=pl.BlockSpec((tb, FC_IN), lambda i, h: (i, 0)),
        scratch_shapes=[pltpu.VMEM((tb, c_pad), jnp.float32)],
        compiler_params=pltpu.CompilerParams(
            dimension_semantics=("parallel", "arbitrary"),
            vmem_limit_bytes=_VMEM_LIMIT),
    )(x3, w_bb, b_bb)


def ief_regressor(xf, s0, p, tb):
    pb = xf.shape[0]
    # Single pallas_call over the whole padded batch: the bf16 weights
    # (~7 MiB) are DMA'd once per call (constant index_map, single-buffered),
    # which is the dominant cost below ~512 rows.
    _w = dict(pipeline_mode=pl.Buffered(1))
    return pl.pallas_call(
        _ief_kernel,
        out_shape=jax.ShapeDtypeStruct((pb, STATE_PAD), jnp.float32),
        grid=(pb // tb,),
        in_specs=[
            pl.BlockSpec((tb, FC_IN), lambda i: (i, 0)),               # xf bf16
            pl.BlockSpec((1, STATE_PAD), lambda i: (0, 0), **_w),      # s0 row
            pl.BlockSpec((FC_IN, HIDDEN), lambda i: (0, 0), **_w),     # w1x
            pl.BlockSpec((1, HIDDEN), lambda i: (0, 0), **_w),         # b1
            pl.BlockSpec((STATE_PAD, HIDDEN), lambda i: (0, 0), **_w), # w1s
            pl.BlockSpec((HIDDEN, HIDDEN), lambda i: (0, 0), **_w),    # w2
            pl.BlockSpec((1, HIDDEN), lambda i: (0, 0), **_w),         # b2
            pl.BlockSpec((HIDDEN, STATE_PAD), lambda i: (0, 0), **_w), # wh
            pl.BlockSpec((1, STATE_PAD), lambda i: (0, 0), **_w),      # bh
        ],
        out_specs=pl.BlockSpec((tb, STATE_PAD), lambda i: (i, 0)),
        compiler_params=pltpu.CompilerParams(
            dimension_semantics=("parallel",),
            vmem_limit_bytes=_VMEM_LIMIT),
    )(xf, s0, p['w1x'], p['b1'], p['w1s'], p['w2'], p['b2'], p['wh'], p['bh'])


def rot6d_to_rotmat(x):
    # Matches the HMR reference: (B, 144) -> (B*24, 3, 2) row-major, then
    # Gram-Schmidt; columns of the output are (b1, b2, b3).
    x = x.reshape(-1, 3, 2)
    a1 = x[..., 0]
    a2 = x[..., 1]
    b1 = a1 / jnp.maximum(jnp.linalg.norm(a1, axis=-1, keepdims=True), 1e-12)
    a2p = a2 - jnp.sum(b1 * a2, axis=-1, keepdims=True) * b1
    b2 = a2p / jnp.maximum(jnp.linalg.norm(a2p, axis=-1, keepdims=True), 1e-12)
    b3 = jnp.cross(b1, b2)
    return jnp.stack([b1, b2, b3], axis=-1)              # (B*24, 3, 3)


def hmr_forward(x, params, init_pose, init_shape, init_cam):
    B, C, H, W = x.shape
    hw = H * W
    pb, tb = _padded_batch(B)
    c_pad = params['w_bb'].shape[0]
    hw_tile = _backbone_hw_tile(tb, hw)
    hw_pad = _round_up(hw, hw_tile)

    x3 = x.reshape(B, C, hw).astype(jnp.float32)
    x3 = jnp.pad(x3, ((0, pb - B), (0, c_pad - C), (0, hw_pad - hw)))

    xf = backbone_standin(x3, params['w_bb'], params['b_bb'], tb, hw_tile)

    # Packed, lane-dense initial state row [pose | shape | cam | zero pad];
    # the per-row broadcast happens inside the IEF kernel.
    s0 = jnp.zeros((1, STATE_PAD), jnp.float32)
    s0 = s0.at[:, :N_POSE].set(init_pose.astype(jnp.float32))
    s0 = s0.at[:, N_POSE:N_POSE + N_SHAPE].set(init_shape.astype(jnp.float32))
    s0 = s0.at[:, N_POSE + N_SHAPE:N_STATE].set(init_cam.astype(jnp.float32))

    s = ief_regressor(xf, s0, params, tb)[:B]            # (B, STATE_PAD)

    pred_pose = s[:, :N_POSE]
    pred_shape = s[:, N_POSE:N_POSE + N_SHAPE]
    pred_cam = s[:, N_POSE + N_SHAPE:N_STATE]
    pred_rotmat = rot6d_to_rotmat(pred_pose).reshape(B, 24, 3, 3)
    return pred_pose, pred_rotmat, pred_shape, pred_cam


# --------------------------- deterministic params ---------------------------

def make_params(key, in_channels, hw):
    ks = jax.random.split(key, 6)
    bf16 = jnp.bfloat16
    c_pad = _round_up(max(in_channels, 1), 8)

    def lin(k, fan_in, fan_out, scale=None):
        if scale is None:
            scale = 1.0 / float(fan_in) ** 0.5
        return jax.random.normal(k, (fan_in, fan_out), jnp.float32) * scale

    p = {}
    # TODO(synk): stand-in weights for the pretrained ResNet50 backbone.
    # 1/HW mean-pool scale folded in here (once), C padded to 8 sublanes.
    w_bb = jnp.zeros((c_pad, FC_IN), jnp.float32)
    w_bb = w_bb.at[:in_channels].set(lin(ks[0], in_channels, FC_IN) * (1.0 / hw))
    p['w_bb'] = w_bb
    p['b_bb'] = jnp.zeros((1, FC_IN), jnp.float32)

    # fc1: (FC_IN + n_pose + 13) -> 1024, split into the xf column block and a
    # packed [pose|shape|cam|pad] state column block (pad rows zero).
    w1_full = lin(ks[1], FC_IN + N_STATE, HIDDEN)
    p['w1x'] = w1_full[:FC_IN].astype(bf16)                      # (2048, 1024)
    w1s = jnp.zeros((STATE_PAD, HIDDEN), jnp.float32)
    w1s = w1s.at[:N_STATE].set(w1_full[FC_IN:])
    p['w1s'] = w1s.astype(bf16)                                  # (256, 1024)
    p['b1'] = jnp.zeros((1, HIDDEN), jnp.float32)

    # fc2: 1024 -> 1024
    p['w2'] = lin(ks[2], HIDDEN, HIDDEN).astype(bf16)
    p['b2'] = jnp.zeros((1, HIDDEN), jnp.float32)

    # Output heads fused lane-dense: [pose(144) | shape(10) | cam(3) | pad].
    # (xavier gain=0.01 stand-in -> tiny weights.)
    wh = jnp.zeros((HIDDEN, STATE_PAD), jnp.float32)
    wh = wh.at[:, :N_POSE].set(lin(ks[3], HIDDEN, N_POSE, scale=1e-3))
    wh = wh.at[:, N_POSE:N_POSE + N_SHAPE].set(lin(ks[4], HIDDEN, N_SHAPE, scale=1e-3))
    wh = wh.at[:, N_POSE + N_SHAPE:N_STATE].set(lin(ks[5], HIDDEN, N_CAM, scale=1e-3))
    p['wh'] = wh.astype(bf16)                                    # (1024, 256)
    p['bh'] = jnp.zeros((1, STATE_PAD), jnp.float32)
    return p


if __name__ == "__main__":
    key = jax.random.PRNGKey(0)
    kx, kp = jax.random.split(key)

    # NOTE: B=2 exercises correctness only; for throughput batch >=128 rows so
    # the MXU M dimension is filled and the ~7 MiB of bf16 weights amortize.
    B, C, H, W = 2, 3, 16, 16
    x = jax.random.normal(kx, (B, C, H, W), jnp.float32)
    params = make_params(kp, C, H * W)

    # TODO(synk): deterministic stand-in for the SMPL mean-params .npz buffers.
    init_pose = jnp.tile(jnp.array([1., 0., 0., 1., 0., 0.], jnp.float32),
                         (24,))[None, :]                 # (1, 144), identity 6d
    init_shape = jnp.zeros((1, N_SHAPE), jnp.float32)    # (1, 10)
    init_cam = jnp.array([[0.9, 0.0, 0.0]], jnp.float32)  # (1, 3)

    outs = hmr_forward(x, params, init_pose, init_shape, init_cam)
    outs = jax.block_until_ready(outs)
    pred_pose, pred_rotmat, pred_shape, pred_cam = outs

    assert pred_pose.shape == (B, N_POSE)
    assert pred_rotmat.shape == (B, 24, 3, 3)
    assert pred_shape.shape == (B, N_SHAPE)
    assert pred_cam.shape == (B, N_CAM)
    assert all(bool(jnp.all(jnp.isfinite(o))) for o in
               (pred_pose, pred_rotmat, pred_shape, pred_cam))

    print("KERNEL_OK")
</pallas_src>

<mosaic_0001>
module attributes {stable_mosaic.version = 11 : i64} {
  func.func @_backbone_kernel(%arg0: i32, %arg1: i32, %arg2: memref<16x8x256xf32, #tpu.memory_space<vmem>>, %arg3: memref<8x2048xf32, #tpu.memory_space<vmem>>, %arg4: memref<1x2048xf32, #tpu.memory_space<vmem>>, %arg5: memref<16x2048xbf16, #tpu.memory_space<vmem>>, %arg6: memref<16x8xf32, #tpu.memory_space<vmem>>) attributes {dimension_semantics = [#tpu.dimension_semantics<parallel>, #tpu.dimension_semantics<arbitrary>], iteration_bounds = array<i64: 1, 1>, scalar_prefetch = 0 : i64, scratch_operands = 1 : i64, tpu.core_type = #tpu.core_type<tc>, window_params = [{transform_indices = @transform_0, window_bounds = array<i64: 16, 8, 256>}, {pipeline_mode = #tpu.pipeline_mode<synchronous>, transform_indices = @transform_1, window_bounds = array<i64: 8, 2048>}, {pipeline_mode = #tpu.pipeline_mode<synchronous>, transform_indices = @transform_2, window_bounds = array<i64: 1, 2048>}, {transform_indices = @transform_3, window_bounds = array<i64: 16, 2048>}]} {
    %c0_i32 = arith.constant 0 : i32
    %0 = arith.cmpi eq, %arg1, %c0_i32 : i32
    %1 = arith.extui %0 : i1 to i32
    %c0_i32_0 = arith.constant 0 : i32
    %2 = arith.cmpi ne, %1, %c0_i32_0 : i32
    scf.if %2 {
      %cst_9 = arith.constant 0.000000e+00 : f32
      %11 = vector.broadcast %cst_9 : f32 to vector<16x8xf32>
      %c0_10 = arith.constant 0 : index
      %c0_11 = arith.constant 0 : index
      %12 = vector.load %arg6[%c0_10, %c0_11] : memref<16x8xf32, #tpu.memory_space<vmem>>, vector<16x8xf32>
      tpu.vector_store %arg6[%c0_10, %c0_11], %11 {strides = array<i32>} : memref<16x8xf32, #tpu.memory_space<vmem>>, vector<16x8xf32>,
    } else {
    }
    %c0 = arith.constant 0 : index
    %c0_1 = arith.constant 0 : index
    %3 = vector.load %arg6[%c0, %c0_1] : memref<16x8xf32, #tpu.memory_space<vmem>>, vector<16x8xf32>
    %c0_2 = arith.constant 0 : index
    %c0_3 = arith.constant 0 : index
    %c0_4 = arith.constant 0 : index
    %4 = vector.load %arg2[%c0_2, %c0_3, %c0_4] : memref<16x8x256xf32, #tpu.memory_space<vmem>>, vector<16x8x256xf32>
    %cst = arith.constant dense<0.000000e+00> : vector<16x8xf32>
    %5 = vector.multi_reduction <add>, %4, %cst [2] : vector<16x8x256xf32> to vector<16x8xf32>
    %6 = arith.addf %3, %5 : vector<16x8xf32>
    %c0_5 = arith.constant 0 : index
    %c0_6 = arith.constant 0 : index
    %7 = vector.load %arg6[%c0_5, %c0_6] : memref<16x8xf32, #tpu.memory_space<vmem>>, vector<16x8xf32>
    tpu.vector_store %arg6[%c0_5, %c0_6], %6 {strides = array<i32>} : memref<16x8xf32, #tpu.memory_space<vmem>>, vector<16x8xf32>,
    %c0_i32_7 = arith.constant 0 : i32
    %8 = arith.cmpi eq, %arg1, %c0_i32_7 : i32
    %9 = arith.extui %8 : i1 to i32
    %c0_i32_8 = arith.constant 0 : i32
    %10 = arith.cmpi ne, %9, %c0_i32_8 : i32
    scf.if %10 {
      %c0_9 = arith.constant 0 : index
      %c0_10 = arith.constant 0 : index
      %11 = vector.load %arg6[%c0_9, %c0_10] : memref<16x8xf32, #tpu.memory_space<vmem>>, vector<16x8xf32>
      %c0_11 = arith.constant 0 : index
      %c0_12 = arith.constant 0 : index
      %12 = vector.load %arg3[%c0_11, %c0_12] : memref<8x2048xf32, #tpu.memory_space<vmem>>, vector<8x2048xf32>
      %cst_13 = arith.constant dense<0.000000e+00> : vector<16x2048xf32>
      %13 = tpu.matmul %11, %12, %cst_13 {dimension_numbers = #tpu.dot_dimension_numbers<[1], [0], [0], [1], [0, 0, 1, 1], [], []>} : vector<16x8xf32>, vector<8x2048xf32>, vector<16x2048xf32> -> vector<16x2048xf32>
      %c0_14 = arith.constant 0 : index
      %c0_15 = arith.constant 0 : index
      %14 = vector.load %arg4[%c0_14, %c0_15] : memref<1x2048xf32, #tpu.memory_space<vmem>>, vector<1x2048xf32>
      %15 = vector.broadcast %14 : vector<1x2048xf32> to vector<16x2048xf32>
      %16 = arith.addf %13, %15 : vector<16x2048xf32>
      %cst_16 = arith.constant 0.000000e+00 : f32
      %17 = vector.broadcast %cst_16 : f32 to vector<16x2048xf32>
      %18 = arith.maximumf %16, %17 : vector<16x2048xf32>
      %19 = arith.truncf %18 : vector<16x2048xf32> to vector<16x2048xbf16>
      %c0_17 = arith.constant 0 : index
      %c0_18 = arith.constant 0 : index
      %20 = vector.load %arg5[%c0_17, %c0_18] : memref<16x2048xbf16, #tpu.memory_space<vmem>>, vector<16x2048xbf16>
      tpu.vector_store %arg5[%c0_17, %c0_18], %19 {strides = array<i32>} : memref<16x2048xbf16, #tpu.memory_space<vmem>>, vector<16x2048xbf16>,
    } else {
    }
    return
  }
  func.func @transform_0(%arg0: i32, %arg1: i32) -> (i32, i32, i32) {
    %c0_i32 = arith.constant 0 : i32
    %c0_i32_0 = arith.constant 0 : i32
    return %arg0, %c0_i32, %arg1 : i32, i32, i32
  }
  func.func @transform_1(%arg0: i32, %arg1: i32) -> (i32, i32) {
    %c0_i32 = arith.constant 0 : i32
    %c0_i32_0 = arith.constant 0 : i32
    %c0_i32_1 = arith.constant 0 : i32
    return %c0_i32, %c0_i32_0 : i32, i32
  }
  func.func @transform_2(%arg0: i32, %arg1: i32) -> (i32, i32) {
    %c0_i32 = arith.constant 0 : i32
    %c0_i32_0 = arith.constant 0 : i32
    %c0_i32_1 = arith.constant 0 : i32
    return %c0_i32, %c0_i32_0 : i32, i32
  }
  func.func @transform_3(%arg0: i32, %arg1: i32) -> (i32, i32) {
    %c0_i32 = arith.constant 0 : i32
    %c0_i32_0 = arith.constant 0 : i32
    return %arg0, %c0_i32 : i32, i32
  }
}

</mosaic_0001>

<bundles_post_ra>
// kernel: tpu_custom_call.1
= control target key start
LH: loop header
LB: loop body
LE: loop exit
PB: predicated region body
PF: predicated region fallthrough
CT: control target
= control target key end

     0   :  { %8 = vsyncpa [#allocation4], 0  ;;  %s1470_s0 = inlined_call_operand.hbm [shape: f32[16,8,256], index: 0, kind: input, shape index: {}]   ;;  %s1471_s1 = inlined_call_operand.hbm [shape: f32[8,2048], index: 1, kind: input, shape index: {}]   ;;  %s1472_s2 = inlined_call_operand.hbm [shape: f32[1,2048], index: 2, kind: input, shape index: {}]   ;;  %s1473_s3 = inlined_call_operand.hbm [shape: bf16[16,2048], index: 3, kind: output, shape index: {}]  }
   0x1   :  { %9 = vsyncpa [#allocation7], 0 }
   0x2   :  { %10 = vsyncpa [#allocation5], 0  ;;  %s1291_s12 = smov [#allocation6]   ;;  %s1292_s14 = smov [#allocation3]  }
   0x3   :  { %s29_s13 = sshll.u32 %s1291_s12, 4  ;;  %s16_s15 = sshll.u32 %s1292_s14, 4  ;;  %s30_s13 = int_to_ptr.vmem [resolvable:$true] %s29_s13  ;;  %s1320_s15 = int_to_ptr.vmem [resolvable:$true] %s16_s15 }
   0x4   :  { %s1197_s18 = scalar_lea.hbm %s1471_s1, 2048 }
   0x5   :  { %p1198_p0 = scmp.ne.s32.totalorder %s1471_s1, %s1197_s18  ;;  %p1201_p1 = scmp.lt.u32.totalorder %s1197_s18, %s1471_s1 }
   0x7   :  { %p1203_p2 = pnand %p1201_p1, %p1198_p0 }
   0x9   :  { %1206 = shalt.err (!%p1203_p2)
}
   0xa   :  { %s1207_s23 = scalar_lea.vmem %s30_s13, 2048  ;;  %p1212_p4 = scmp.lt.s32.totalorder %s30_s13, %s30_s13 }
   0xb   :  { %p1208_p3 = scmp.ne.s32.totalorder %s30_s13, %s1207_s23  ;;  %p1213_p5 = scmp.lt.s32.totalorder %s1207_s23, %s1207_s23 }
   0xd   :  { %p1214_p6 = por %p1213_p5, %p1212_p4 }
   0xf   :  { %p1215_p7 = pnand %p1214_p6, %p1208_p3 }
  0x11   :  { %1218 = shalt.err (!%p1215_p7)
}
  0x12   :  { %32 = dma.hbm_to_vmem [thread:$0]  %s1471_s1, 2048, %s30_s13, [#allocation7]  }
  0x13   :  { %s1219_s28 = scalar_lea.hbm %s1470_s0, 4096 }
  0x14   :  { %p1220_p8 = scmp.ne.s32.totalorder %s1470_s0, %s1219_s28  ;;  %p1223_p9 = scmp.lt.u32.totalorder %s1219_s28, %s1470_s0 }
  0x16   :  { %p1225_p10 = pnand %p1223_p9, %p1220_p8 }
  0x18   :  { %1228 = shalt.err (!%p1225_p10)
}
  0x19   :  { %s1229_s6 = scalar_lea.vmem %s1320_s15, 4096  ;;  %p1234_p12 = scmp.lt.s32.totalorder %s1320_s15, %s1320_s15 }
  0x1a   :  { %p1230_p11 = scmp.ne.s32.totalorder %s1320_s15, %s1229_s6  ;;  %p1235_p13 = scmp.lt.s32.totalorder %s1229_s6, %s1229_s6 }
  0x1c   :  { %p1236_p0 = por %p1235_p13, %p1234_p12 }
  0x1e   :  { %p1237_p1 = pnand %p1236_p0, %p1230_p11 }
  0x20   :  { %1240 = shalt.err (!%p1237_p1)
}
  0x21   :  { %s1293_s1 = smov 256   ;;  %s1294_s7 = smov 16  }
  0x22   :  { %22 = dma.hbm_to_vmem [thread:$0]  %s1470_s0, 4096, %s1320_s15, [#allocation4], %s1293_s1, %s1293_s1, %s1294_s7  }
  0x23   :  { %s1295_s10 = smov [#allocation8]   ;;  %s1241_s14 = scalar_lea.hbm %s1472_s2, 256 }
  0x24   :  { %s39_s11 = sshll.u32 %s1295_s10, 4  ;;  %p1242_p2 = scmp.ne.s32.totalorder %s1472_s2, %s1241_s14  ;;  %s40_s11 = int_to_ptr.vmem [resolvable:$true] %s39_s11 }
  0x25   :  { %p1245_p3 = scmp.lt.u32.totalorder %s1241_s14, %s1472_s2 }
  0x27   :  { %p1247_p4 = pnand %p1245_p3, %p1242_p2 }
  0x29   :  { %1250 = shalt.err (!%p1247_p4)
}
  0x2a   :  { %s1251_s20 = scalar_lea.vmem %s40_s11, 256  ;;  %p1256_p6 = scmp.lt.s32.totalorder %s40_s11, %s40_s11 }
  0x2b   :  { %p1252_p5 = scmp.ne.s32.totalorder %s40_s11, %s1251_s20  ;;  %p1257_p7 = scmp.lt.s32.totalorder %s1251_s20, %s1251_s20 }
  0x2d   :  { %p1258_p8 = por %p1257_p7, %p1256_p6 }
  0x2f   :  { %p1259_p9 = pnand %p1258_p8, %p1252_p5 }
  0x31   :  { %1262 = shalt.err (!%p1259_p9)
}
  0x32   :  { %42 = dma.hbm_to_vmem [thread:$0]  %s1472_s2, 256, %s40_s11, [#allocation7]  }
  0x33   :  { %1285 = dma.done.wait [#allocation4], 4096  }
  0x34   :  { %1286 = vsyncadd [#allocation4], 4294963200 }
  0x35   :  { %1287 = dma.done.wait [#allocation7], 2304  }
  0x36   :  { %1288 = vsyncadd [#allocation7], 4294964992  ;;  %v65_v0 = vld [vmem:[#allocation3 + $0x20] sm:$0xff]  ;;  %v66_v1 = vld [vmem:[#allocation3 + $0x28] sm:$0xff]  ;;  %vm56_vm0 = vcmask 64512   ;;  %v1296_v48 = vmov 0.0   ;;  %v157_v55 = vlaneseq }
  0x37   :  { %v61_v2 = vld [vmem:[#allocation3] sm:$0xff]  ;;  %v99_v3 = vadd.f32 %v66_v1, %v65_v0  ;;  %v62_v4 = vld [vmem:[#allocation3 + $0x8] sm:$0xff]  ;;  %v67_v5 = vld [vmem:[#allocation3 + $0x30] sm:$0xff]  ;;  %57 = vst.msk [vmem:[#allocation2] sm:$0xff] %vm56_vm0, %v1296_v48  ;;  %426 = vmatprep.mubr.f32.mxu0 %v1296_v48  ;;  %503 = vmatprep.mubr.f32.mxu1 %v1296_v48  ;;  %vm223_vm1 = vcmask 1041409   ;;  %vm225_vm2 = vcmask 1042434  }
  0x38   :  { %v68_v6 = vld [vmem:[#allocation3 + $0x38] sm:$0xff]  ;;  %v93_v7 = vadd.f32 %v62_v4, %v61_v2  ;;  %v63_v8 = vld [vmem:[#allocation3 + $0x10] sm:$0xff]  ;;  %v69_v14 = vld [vmem:[#allocation3 + $0x40] sm:$0xff]  ;;  %58 = vst.msk [vmem:[#allocation2 + $0x8] sm:$0xff] %vm56_vm0, %v1296_v48  ;;  %v158_v56 = vand.u32 127, %v157_v55  ;;  %v1369_v57 = vshrl.u32 %v157_v55, 7 }
  0x39   :  { %v64_v9 = vld [vmem:[#allocation3 + $0x18] sm:$0xff]  ;;  %100 = vadd.xlane.f32.xlu1 %v99_v3  ;;  %v102_v10 = vadd.f32 %v68_v6, %v67_v5  ;;  %v71_v12 = vld [vmem:[#allocation3 + $0x50] sm:$0xff]  ;;  %v70_v15 = vld [vmem:[#allocation3 + $0x48] sm:$0xff]  ;;  %vm227_vm3 = vcmask 1043459   ;;  %vm229_vm4 = vcmask 1044484   ;;  %vm231_vm5 = vcmask 1045509  }
  0x3a   :  { %94 = vadd.xlane.f32.xlu0 %v93_v7  ;;  %v96_v11 = vadd.f32 %v64_v9, %v63_v8  ;;  %v72_v13 = vld [vmem:[#allocation3 + $0x58] sm:$0xff]  ;;  %v105_v17 = vadd.f32 %v70_v15, %v69_v14  ;;  %v79_v18 = vld [vmem:[#allocation3 + $0x90] sm:$0xff]  ;;  %v77_v20 = vld [vmem:[#allocation3 + $0x80] sm:$0xff]  ;;  %v161_v60 = vsub.s32 %v158_v56, %v1369_v57  ;;  %vm233_vm6 = vcmask 1046534   ;;  %s1297_s2 = smov [#allocation9]  }
  0x3b   :  { %v108_v16 = vadd.f32 %v72_v13, %v71_v12  ;;  %v80_v19 = vld [vmem:[#allocation3 + $0x98] sm:$0xff]  ;;  %v78_v21 = vld [vmem:[#allocation3 + $0x88] sm:$0xff]  ;;  %v81_v24 = vld [vmem:[#allocation3 + $0xa0] sm:$0xff]  ;;  %vm235_vm7 = vcmask 1047559   ;;  %s1127_s21 = sshll.u32 %s1297_s2, 4  ;;  %s1128_s21 = int_to_ptr.vmem [resolvable:$true] %s1127_s21 }
  0x3c   :  { %v120_v22 = vadd.f32 %v80_v19, %v79_v18  ;;  %v117_v23 = vadd.f32 %v78_v21, %v77_v20  ;;  %v82_v25 = vld [vmem:[#allocation3 + $0xa8] sm:$0xff]  ;;  %v73_v26 = vld [vmem:[#allocation3 + $0x60] sm:$0xff]  ;;  %v83_v30 = vld [vmem:[#allocation3 + $0xb0] sm:$0xff]  ;;  %s1263_s22 = scalar_lea.vmem %s1128_s21, 2048  ;;  %p1268_p11 = scmp.lt.s32.totalorder %s1128_s21, %s1128_s21 }
  0x3d   :  { %103 = vadd.xlane.f32.xlu1 %v102_v10  ;;  %v74_v27 = vld [vmem:[#allocation3 + $0x68] sm:$0xff]  ;;  %v123_v28 = vadd.f32 %v82_v25, %v81_v24  ;;  %v84_v31 = vld [vmem:[#allocation3 + $0xb8] sm:$0xff]  ;;  %v75_v32 = vld [vmem:[#allocation3 + $0x70] sm:$0xff]  ;;  %p1264_p10 = scmp.ne.s32.totalorder %s1128_s21, %s1263_s22  ;;  %p1269_p12 = scmp.lt.s32.totalorder %s1263_s22, %s1263_s22 }
  0x3e   :  { %97 = vadd.xlane.f32.xlu0 %v96_v11  ;;  %v111_v29 = vadd.f32 %v74_v27, %v73_v26  ;;  %v76_v33 = vld [vmem:[#allocation3 + $0x78] sm:$0xff]  ;;  %v126_v34 = vadd.f32 %v84_v31, %v83_v30  ;;  %v87_v36 = vld [vmem:[#allocation3 + $0xd0] sm:$0xff]  ;;  %v85_v38 = vld [vmem:[#allocation3 + $0xc0] sm:$0xff] }
  0x3f   :  { %v114_v35 = vadd.f32 %v76_v33, %v75_v32  ;;  %v88_v37 = vld [vmem:[#allocation3 + $0xd8] sm:$0xff]  ;;  %v86_v39 = vld [vmem:[#allocation3 + $0xc8] sm:$0xff]  ;;  %v91_v42 = vld [vmem:[#allocation3 + $0xf0] sm:$0xff]  ;;  %p1270_p13 = por %p1269_p12, %p1268_p11 }
  0x40   :  { %v132_v40 = vadd.f32 %v88_v37, %v87_v36  ;;  %v129_v41 = vadd.f32 %v86_v39, %v85_v38  ;;  %v92_v43 = vld [vmem:[#allocation3 + $0xf8] sm:$0xff]  ;;  %v89_v44 = vld [vmem:[#allocation3 + $0xe0] sm:$0xff]  ;;  %v90_v45 = vld [vmem:[#allocation3 + $0xe8] sm:$0xff] }
  0x41   :  { %109 = vadd.xlane.f32.xlu1 %v108_v16  ;;  %v138_v46 = vadd.f32 %v92_v43, %v91_v42  ;;  %v135_v47 = vadd.f32 %v90_v45, %v89_v44  ;;  %v257_v49 = vld [vmem:[#allocation6 + $0x8] sm:$0xff]  ;;  %v259_v50 = vld [vmem:[#allocation6 + $0x18] sm:$0xff]  ;;  %v256_v51 = vld [vmem:[#allocation6] sm:$0xff]  ;;  %p1271_p0 = pnand %p1270_p13, %p1264_p10 }
  0x42   :  { %106 = vadd.xlane.f32.xlu0 %v105_v17  ;;  %362 = vmatprep.subr.mxu0 %v257_v49  ;;  %v258_v52 = vld [vmem:[#allocation6 + $0x10] sm:$0xff]  ;;  %v261_v53 = vld [vmem:[#allocation6 + $0x28] sm:$0xff]  ;;  %v263_v54 = vld [vmem:[#allocation6 + $0x38] sm:$0xff] }
  0x43   :  { %439 = vmatprep.subr.mxu1 %v259_v50  ;;  %363 = vmatpush1.msra.mxu0 %v256_v51  ;;  %v260_v44 = vld [vmem:[#allocation6 + $0x20] sm:$0xff]  ;;  %v262_v45 = vld [vmem:[#allocation6 + $0x30] sm:$0xff]  ;;  %v265_v49 = vld [vmem:[#allocation6 + $0x48] sm:$0xff] }
  0x44   :  { %440 = vmatpush1.msra.mxu1 %v258_v52  ;;  %516 = vmatprep.subr.mxu0 %v261_v53  ;;  %v267_v50 = vld [vmem:[#allocation6 + $0x58] sm:$0xff]  ;;  %v264_v52 = vld [vmem:[#allocation6 + $0x40] sm:$0xff]  ;;  %v266_v53 = vld [vmem:[#allocation6 + $0x50] sm:$0xff] }
  0x45   :  { %121 = vadd.xlane.f32.xlu1 %v120_v22  ;;  %593 = vmatprep.subr.mxu1 %v263_v54  ;;  %v59_v22 = vld [vmem:[#allocation2] sm:$0xff]  ;;  %v269_v54 = vld [vmem:[#allocation6 + $0x68] sm:$0xff]  ;;  %v271_v55 = vld [vmem:[#allocation6 + $0x78] sm:$0xff] }
  0x46   :  { %118 = vadd.xlane.f32.xlu0 %v117_v23  ;;  %v268_v56 = vld [vmem:[#allocation6 + $0x60] sm:$0xff] }
  0x49   :  { %124 = vadd.xlane.f32.xlu1 %v123_v28 }
  0x4a   :  { %112 = vadd.xlane.f32.xlu0 %v111_v29 }
  0x4d   :  { %127 = vadd.xlane.f32.xlu1 %v126_v34 }
  0x4e   :  { %115 = vadd.xlane.f32.xlu0 %v114_v35 }
  0x51   :  { %133 = vadd.xlane.f32.xlu1 %v132_v40 }
  0x52   :  { %130 = vadd.xlane.f32.xlu0 %v129_v41  ;;  %v60_v41 = vld [vmem:[#allocation2 + $0x8] sm:$0xff] }
  0x55   :  { %139 = vadd.xlane.f32.xlu1 %v138_v46 }
  0x56   :  { %136 = vadd.xlane.f32.xlu0 %v135_v47 }
  0xc6   :  { %v101_v58 = vpop.xlane.xlu1 %100 }
  0xc7   :  { %v95_v59 = vpop.xlane.xlu0 %94  ;;  %v170_v4 = vrot.slane %v101_v58, %v161_v60  ;;  %v270_v58 = vld [vmem:[#allocation6 + $0x70] sm:$0xff] }
  0xc8   :  { %v162_v0 = vrot.slane %v95_v59, %v161_v60  ;;  %v278_v59 = vsub.s32 0, %v1369_v57 }
  0xca   :  { %v104_v61 = vpop.xlane.xlu1 %103 }
  0xcb   :  { %v98_v62 = vpop.xlane.xlu0 %97  ;;  %v174_v5 = vrot.slane %v104_v61, %v161_v60  ;;  %v272_v61 = vld [vmem:[#allocation8] sm:$0xff] }
  0xcc   :  { %v166_v63 = vrot.slane %v98_v62, %v161_v60  ;;  %v282_v62 = vsub.s32 1, %v1369_v57 }
  0xce   :  { %v110_v1 = vpop.xlane.xlu1 %109  ;;  %v224_v3 = vsel %vm223_vm1, %v166_v63, %v162_v0  ;;  %v290_v63 = vsub.s32 3, %v1369_v57  ;;  %v279_v0 = vrot.slane %v272_v61, %v278_v59 }
  0xcf   :  { %v107_v2 = vpop.xlane.xlu0 %106  ;;  %v226_v7 = vsel %vm225_vm2, %v170_v4, %v224_v3  ;;  %v182_v13 = vrot.slane %v110_v1, %v161_v60 }
  0xd0   :  { %v178_v9 = vrot.slane %v107_v2, %v161_v60  ;;  %v228_v10 = vsel %vm227_vm3, %v174_v5, %v226_v7  ;;  %v291_v2 = vrot.slane %v272_v61, %v290_v63 }
  0xd2   :  { %v122_v6 = vpop.xlane.xlu1 %121  ;;  %v230_v14 = vsel %vm229_vm4, %v178_v9, %v228_v10 }
  0xd3   :  { %v119_v8 = vpop.xlane.xlu0 %118  ;;  %v198_v17 = vrot.slane %v122_v6, %v161_v60  ;;  %v232_v21 = vsel %vm231_vm5, %v182_v13, %v230_v14 }
  0xd4   :  { %v194_v18 = vrot.slane %v119_v8, %v161_v60 }
  0xd6   :  { %v125_v11 = vpop.xlane.xlu1 %124  ;;  %v237_v28 = vsel %vm223_vm1, %v198_v17, %v194_v18  ;;  %v294_v17 = vsub.s32 4, %v1369_v57  ;;  %v302_v18 = vsub.s32 6, %v1369_v57 }
  0xd7   :  { %v113_v12 = vpop.xlane.xlu0 %112  ;;  %v202_v20 = vrot.slane %v125_v11, %v161_v60 }
  0xd8   :  { %v186_v15 = vrot.slane %v113_v12, %v161_v60 }
  0xd9   :  { %v238_v31 = vsel %vm225_vm2, %v202_v20, %v237_v28  ;;  %v306_v20 = vsub.s32 7, %v1369_v57  ;;  %v303_v28 = vrot.slane %v272_v61, %v302_v18 }
  0xda   :  { %v128_v16 = vpop.xlane.xlu1 %127  ;;  %v234_v24 = vsel %vm233_vm6, %v186_v15, %v232_v21 }
  0xdb   :  { %v116_v19 = vpop.xlane.xlu0 %115  ;;  %v206_v25 = vrot.slane %v128_v16, %v161_v60 }
  0xdc   :  { %v190_v23 = vrot.slane %v116_v19, %v161_v60  ;;  %v298_v19 = vsub.s32 5, %v1369_v57 }
  0xdd   :  { %v239_v33 = vsel %vm227_vm3, %v206_v25, %v238_v31 }
  0xde   :  { %v236_v26 = vsel %vm235_vm7, %v190_v23, %v234_v24  ;;  %v134_v27 = vpop.xlane.xlu1 %133  ;;  %v299_v31 = vrot.slane %v272_v61, %v298_v19 }
  0xdf   :  { %v246_v29 = vadd.f32 %v236_v26, %v59_v22  ;;  %v131_v30 = vpop.xlane.xlu0 %130  ;;  %v214_v34 = vrot.slane %v134_v27, %v161_v60  ;;  %v295_v27 = vrot.slane %v272_v61, %v294_v17 }
  0xe0   :  { %v210_v32 = vrot.slane %v131_v30, %v161_v60 }
  0xe1   :  { %249 = vst.msk [vmem:[#allocation2] sm:$0xff] %vm56_vm0, %v246_v29 }
  0xe2   :  { %v240_v35 = vsel %vm229_vm4, %v210_v32, %v239_v33  ;;  %v140_v36 = vpop.xlane.xlu1 %139  ;;  %v307_v32 = vrot.slane %v272_v61, %v306_v20 }
  0xe3   :  { %v137_v37 = vpop.xlane.xlu0 %136  ;;  %v222_v38 = vrot.slane %v140_v36, %v161_v60  ;;  %v241_v40 = vsel %vm231_vm5, %v214_v34, %v240_v35 }
  0xe4   :  { %v218_v39 = vrot.slane %v137_v37, %v161_v60  ;;  %v286_v60 = vsub.s32 2, %v1369_v57 }
  0xe6   :  { %v242_v42 = vsel %vm233_vm6, %v218_v39, %v241_v40  ;;  %v287_v1 = vrot.slane %v272_v61, %v286_v60 }
  0xe7   :  { %v243_v43 = vsel %vm235_vm7, %v222_v38, %v242_v42 }
  0xe8   :  { %v247_v46 = vadd.f32 %v243_v43, %v60_v41  ;;  %v254_v47 = vld [vmem:[#allocation2] sm:$0xff]  ;;  %v273_v43 = vld [vmem:[#allocation8 + $0x8] sm:$0xff] }
  0xe9   :  { %1140 = vmatmul.mubr.msk.f32.vlgmr.msra.gmra.mrb[0].mxu0 %vm56_vm0, %v254_v47  ;;  %1142 = vmatmul.mubr.msk.f32.vlgmr.msra.gmra.mrb[0].mxu1 %vm56_vm0, %v254_v47 }
  0xea   :  { %250 = vst.msk [vmem:[#allocation2 + $0x8] sm:$0xff] %vm56_vm0, %v247_v46  ;;  %517 = vmatpush1.msra.mxu0 %v260_v44  ;;  %594 = vmatpush1.msra.mxu1 %v262_v45 }
  0xeb   :  { %432 = vmatprep.mubr.f32.mxu0 %v1296_v48  ;;  %509 = vmatprep.mubr.f32.mxu1 %v1296_v48 }
  0xec   :  { %670 = vmatprep.subr.mxu0 %v265_v49  ;;  %747 = vmatprep.subr.mxu1 %v267_v50 }
  0xf1   :  { %v255_v51 = vld [vmem:[#allocation2 + $0x8] sm:$0xff] }
  0xf2   :  { %1141 = vmatmul.mubr.msk.f32.gmra.mrb[2].mxu0 %vm56_vm0, %v255_v51  ;;  %1143 = vmatmul.mubr.msk.f32.gmra.mrb[2].mxu1 %vm56_vm0, %v255_v51 }
  0xf3   :  { %580 = vmatprep.mubr.f32.mxu0 %v1296_v48  ;;  %657 = vmatprep.mubr.f32.mxu1 %v1296_v48 }
  0xf6   :  { %1144 = vmatmul.mubr.msk.f32.vlgmr.msra.gmra.mrb[4].mxu0 %vm56_vm0, %v254_v47  ;;  %1146 = vmatmul.mubr.msk.f32.vlgmr.msra.gmra.mrb[4].mxu1 %vm56_vm0, %v254_v47 }
  0xf7   :  { %671 = vmatpush1.msra.mxu0 %v264_v52  ;;  %748 = vmatpush1.msra.mxu1 %v266_v53 }
  0xf8   :  { %586 = vmatprep.mubr.f32.mxu0 %v1296_v48  ;;  %663 = vmatprep.mubr.f32.mxu1 %v1296_v48 }
  0xf9   :  { %824 = vmatprep.subr.mxu0 %v269_v54  ;;  %901 = vmatprep.subr.mxu1 %v271_v55  ;;  %v311_v55 = vrot.slane %v273_v43, %v278_v59 }
  0xfa   :  { %1145 = vmatmul.mubr.msk.f32.gmra.mrb[6].mxu0 %vm56_vm0, %v255_v51  ;;  %1147 = vmatmul.mubr.msk.f32.gmra.mrb[6].mxu1 %vm56_vm0, %v255_v51 }
  0xfb   :  { %734 = vmatprep.mubr.f32.mxu0 %v1296_v48  ;;  %811 = vmatprep.mubr.f32.mxu1 %v1296_v48 }
  0xfe   :  { %1148 = vmatmul.mubr.msk.f32.vlgmr.msra.gmra.mrb[8].mxu0 %vm56_vm0, %v254_v47  ;;  %1150 = vmatmul.mubr.msk.f32.vlgmr.msra.gmra.mrb[8].mxu1 %vm56_vm0, %v254_v47 }
  0xff   :  { %825 = vmatpush1.msra.mxu0 %v268_v56  ;;  %902 = vmatpush1.msra.mxu1 %v270_v58  ;;  %v319_v56 = vrot.slane %v273_v43, %v286_v60 }
 0x100   :  { %740 = vmatprep.mubr.f32.mxu0 %v1296_v48  ;;  %817 = vmatprep.mubr.f32.mxu1 %v1296_v48 }
 0x102   :  { %1149 = vmatmul.mubr.msk.f32.gmra.mrb[10].mxu0 %vm56_vm0, %v255_v51  ;;  %1151 = vmatmul.mubr.msk.f32.gmra.mrb[10].mxu1 %vm56_vm0, %v255_v51 }
 0x103   :  { %888 = vmatprep.mubr.f32.mxu0 %v1296_v48  ;;  %965 = vmatprep.mubr.f32.mxu1 %v1296_v48 }
 0x106   :  { %1152 = vmatmul.mubr.msk.f32.vlgmr.msra.gmra.mrb[12].mxu0 %vm56_vm0, %v254_v47  ;;  %1154 = vmatmul.mubr.msk.f32.vlgmr.msra.gmra.mrb[12].mxu1 %vm56_vm0, %v254_v47 }
 0x107   :  { %894 = vmatprep.mubr.f32.mxu0 %v1296_v48  ;;  %971 = vmatprep.mubr.f32.mxu1 %v1296_v48  ;;  %v283_v48 = vrot.slane %v272_v61, %v282_v62 }
 0x10a   :  { %1153 = vmatmul.mubr.msk.f32.gmra.mrb[14].mxu0 %vm56_vm0, %v255_v51  ;;  %1155 = vmatmul.mubr.msk.f32.gmra.mrb[14].mxu1 %vm56_vm0, %v255_v51 }
 0x1bc   :  { %v428_v3 = vpop.f32.mrb[0].mxu0  ;;  %v505_v4 = vpop.f32.mrb[0].mxu1 }
 0x1bd   :  { %v429_v5 = vadd.f32 %v428_v3, %v279_v0  ;;  %v506_v6 = vadd.f32 %v505_v4, %v287_v1  ;;  %v430_v7 = vpop.f32.mrb[1].mxu0  ;;  %v507_v8 = vpop.f32.mrb[1].mxu1 }
 0x1be   :  { %v431_v9 = vadd.f32 %v430_v7, %v283_v48  ;;  %v508_v10 = vadd.f32 %v507_v8, %v291_v2 }
 0x1bf   :  { %v978_v11 = vmax.f32 %v429_v5, 0.0  ;;  %v980_v12 = vmax.f32 %v506_v6, 0.0 }
 0x1c0   :  { %v979_v13 = vmax.f32 %v431_v9, 0.0  ;;  %v981_v14 = vmax.f32 %v508_v10, 0.0 }
 0x1c2   :  { %v1172_v15 = vpack.c.bf16 %v979_v13, %v978_v11  ;;  %v1173_v16 = vpack.c.bf16 %v981_v14, %v980_v12 }
 0x1c4   :  { %1106 = vst [vmem:[#allocation9] sm:$0xff] %v1172_v15  ;;  %1107 = vst [vmem:[#allocation9 + $0x8] sm:$0xff] %v1173_v16 }
 0x1c5   :  { %v434_v21 = vpop.f32.mrb[2].mxu0  ;;  %v511_v22 = vpop.f32.mrb[2].mxu1 }
 0x1c6   :  { %v435_v23 = vadd.f32 %v434_v21, %v279_v0  ;;  %v512_v24 = vadd.f32 %v511_v22, %v287_v1  ;;  %v436_v25 = vpop.f32.mrb[3].mxu0  ;;  %v513_v26 = vpop.f32.mrb[3].mxu1 }
 0x1c7   :  { %v437_v29 = vadd.f32 %v436_v25, %v283_v48  ;;  %v514_v30 = vadd.f32 %v513_v26, %v291_v2  ;;  %v315_v48 = vrot.slane %v273_v43, %v282_v62  ;;  %v323_v2 = vrot.slane %v273_v43, %v290_v63 }
 0x1c8   :  { %v994_v33 = vmax.f32 %v435_v23, 0.0  ;;  %v996_v34 = vmax.f32 %v512_v24, 0.0 }
 0x1c9   :  { %v995_v35 = vmax.f32 %v437_v29, 0.0  ;;  %v997_v36 = vmax.f32 %v514_v30, 0.0  ;;  %v582_v37 = vpop.f32.mrb[4].mxu0  ;;  %v659_v38 = vpop.f32.mrb[4].mxu1 }
 0x1ca   :  { %v583_v39 = vadd.f32 %v582_v37, %v295_v27  ;;  %v660_v40 = vadd.f32 %v659_v38, %v303_v28  ;;  %v584_v41 = vpop.f32.mrb[5].mxu0  ;;  %v661_v42 = vpop.f32.mrb[5].mxu1 }
 0x1cb   :  { %v1180_v44 = vpack.c.bf16 %v995_v35, %v994_v33  ;;  %v1181_v45 = vpack.c.bf16 %v997_v36, %v996_v34  ;;  %v585_v46 = vadd.f32 %v584_v41, %v299_v31  ;;  %v662_v47 = vadd.f32 %v661_v42, %v307_v32 }
 0x1cc   :  { %v982_v49 = vmax.f32 %v583_v39, 0.0  ;;  %v984_v50 = vmax.f32 %v660_v40, 0.0  ;;  %v331_v33 = vrot.slane %v273_v43, %v298_v19  ;;  %v339_v34 = vrot.slane %v273_v43, %v306_v20 }
 0x1cd   :  { %1114 = vst [vmem:[#allocation9 + $0x40] sm:$0xff] %v1180_v44  ;;  %1115 = vst [vmem:[#allocation9 + $0x48] sm:$0xff] %v1181_v45  ;;  %v983_v51 = vmax.f32 %v585_v46, 0.0  ;;  %v985_v52 = vmax.f32 %v662_v47, 0.0  ;;  %v588_v53 = vpop.f32.mrb[6].mxu0  ;;  %v665_v54 = vpop.f32.mrb[6].mxu1 }
 0x1ce   :  { %v589_v58 = vadd.f32 %v588_v53, %v295_v27  ;;  %v666_v61 = vadd.f32 %v665_v54, %v303_v28  ;;  %v590_v0 = vpop.f32.mrb[7].mxu0  ;;  %v667_v1 = vpop.f32.mrb[7].mxu1  ;;  %v327_v27 = vrot.slane %v273_v43, %v294_v17  ;;  %v335_v28 = vrot.slane %v273_v43, %v302_v18 }
 0x1cf   :  { %v1174_v3 = vpack.c.bf16 %v983_v51, %v982_v49  ;;  %v1175_v4 = vpack.c.bf16 %v985_v52, %v984_v50  ;;  %v591_v5 = vadd.f32 %v590_v0, %v299_v31  ;;  %v668_v6 = vadd.f32 %v667_v1, %v307_v32 }
 0x1d0   :  { %v998_v7 = vmax.f32 %v589_v58, 0.0  ;;  %v1000_v8 = vmax.f32 %v666_v61, 0.0 }
 0x1d1   :  { %1108 = vst [vmem:[#allocation9 + $0x10] sm:$0xff] %v1174_v3  ;;  %1109 = vst [vmem:[#allocation9 + $0x18] sm:$0xff] %v1175_v4  ;;  %v999_v59 = vmax.f32 %v591_v5, 0.0  ;;  %v1001_v60 = vmax.f32 %v668_v6, 0.0  ;;  %v736_v9 = vpop.f32.mrb[8].mxu0  ;;  %v813_v10 = vpop.f32.mrb[8].mxu1 }
 0x1d2   :  { %v737_v11 = vadd.f32 %v736_v9, %v311_v55  ;;  %v814_v12 = vadd.f32 %v813_v10, %v319_v56  ;;  %v738_v13 = vpop.f32.mrb[9].mxu0  ;;  %v815_v14 = vpop.f32.mrb[9].mxu1 }
 0x1d3   :  { %v1182_v62 = vpack.c.bf16 %v999_v59, %v998_v7  ;;  %v1183_v15 = vpack.c.bf16 %v1001_v60, %v1000_v8  ;;  %v739_v16 = vadd.f32 %v738_v13, %v315_v48  ;;  %v816_v63 = vadd.f32 %v815_v14, %v323_v2 }
 0x1d4   :  { %v986_v21 = vmax.f32 %v737_v11, 0.0  ;;  %v988_v22 = vmax.f32 %v814_v12, 0.0 }
 0x1d5   :  { %1116 = vst [vmem:[#allocation9 + $0x50] sm:$0xff] %v1182_v62  ;;  %1117 = vst [vmem:[#allocation9 + $0x58] sm:$0xff] %v1183_v15  ;;  %v987_v23 = vmax.f32 %v739_v16, 0.0  ;;  %v989_v24 = vmax.f32 %v816_v63, 0.0  ;;  %v742_v25 = vpop.f32.mrb[10].mxu0  ;;  %v819_v26 = vpop.f32.mrb[10].mxu1 }
 0x1d6   :  { %v743_v29 = vadd.f32 %v742_v25, %v311_v55  ;;  %v820_v30 = vadd.f32 %v819_v26, %v319_v56  ;;  %v744_v31 = vpop.f32.mrb[11].mxu0  ;;  %v821_v32 = vpop.f32.mrb[11].mxu1 }
 0x1d7   :  { %v1176_v35 = vpack.c.bf16 %v987_v23, %v986_v21  ;;  %v1177_v36 = vpack.c.bf16 %v989_v24, %v988_v22  ;;  %v745_v37 = vadd.f32 %v744_v31, %v315_v48  ;;  %v822_v38 = vadd.f32 %v821_v32, %v323_v2 }
 0x1d8   :  { %v1002_v39 = vmax.f32 %v743_v29, 0.0  ;;  %v1004_v40 = vmax.f32 %v820_v30, 0.0 }
 0x1d9   :  { %1110 = vst [vmem:[#allocation9 + $0x20] sm:$0xff] %v1176_v35  ;;  %1111 = vst [vmem:[#allocation9 + $0x28] sm:$0xff] %v1177_v36  ;;  %v1003_v17 = vmax.f32 %v745_v37, 0.0  ;;  %v1005_v18 = vmax.f32 %v822_v38, 0.0  ;;  %v890_v41 = vpop.f32.mrb[12].mxu0  ;;  %v967_v42 = vpop.f32.mrb[12].mxu1 }
 0x1da   :  { %v891_v44 = vadd.f32 %v890_v41, %v327_v27  ;;  %v968_v45 = vadd.f32 %v967_v42, %v335_v28  ;;  %v892_v46 = vpop.f32.mrb[13].mxu0  ;;  %v969_v47 = vpop.f32.mrb[13].mxu1 }
 0x1db   :  { %v1184_v19 = vpack.c.bf16 %v1003_v17, %v1002_v39  ;;  %v1185_v49 = vpack.c.bf16 %v1005_v18, %v1004_v40  ;;  %v893_v57 = vadd.f32 %v892_v46, %v331_v33  ;;  %v970_v20 = vadd.f32 %v969_v47, %v339_v34 }
 0x1dc   :  { %v990_v43 = vmax.f32 %v891_v44, 0.0  ;;  %v992_v50 = vmax.f32 %v968_v45, 0.0 }
 0x1dd   :  { %1118 = vst [vmem:[#allocation9 + $0x60] sm:$0xff] %v1184_v19  ;;  %1119 = vst [vmem:[#allocation9 + $0x68] sm:$0xff] %v1185_v49  ;;  %v991_v51 = vmax.f32 %v893_v57, 0.0  ;;  %v993_v52 = vmax.f32 %v970_v20, 0.0  ;;  %v896_v53 = vpop.f32.mrb[14].mxu0  ;;  %v973_v54 = vpop.f32.mrb[14].mxu1 }
 0x1de   :  { %v897_v55 = vadd.f32 %v896_v53, %v327_v27  ;;  %v974_v56 = vadd.f32 %v973_v54, %v335_v28  ;;  %v898_v58 = vpop.f32.mrb[15].mxu0  ;;  %v975_v61 = vpop.f32.mrb[15].mxu1 }
 0x1df   :  { %v1178_v0 = vpack.c.bf16 %v991_v51, %v990_v43  ;;  %v1179_v1 = vpack.c.bf16 %v993_v52, %v992_v50  ;;  %v899_v48 = vadd.f32 %v898_v58, %v331_v33  ;;  %v976_v2 = vadd.f32 %v975_v61, %v339_v34 }
 0x1e0   :  { %v1006_v3 = vmax.f32 %v897_v55, 0.0  ;;  %v1008_v4 = vmax.f32 %v974_v56, 0.0 }
 0x1e1   :  { %1112 = vst [vmem:[#allocation9 + $0x30] sm:$0xff] %v1178_v0  ;;  %1113 = vst [vmem:[#allocation9 + $0x38] sm:$0xff] %v1179_v1  ;;  %v1007_v5 = vmax.f32 %v899_v48, 0.0  ;;  %v1009_v6 = vmax.f32 %v976_v2, 0.0 }
 0x1e3   :  { %v1186_v7 = vpack.c.bf16 %v1007_v5, %v1006_v3  ;;  %v1187_v8 = vpack.c.bf16 %v1009_v6, %v1008_v4 }
 0x1e5   :  { %1120 = vst [vmem:[#allocation9 + $0x70] sm:$0xff] %v1186_v7  ;;  %1121 = vst [vmem:[#allocation9 + $0x78] sm:$0xff] %v1187_v8 }
 0x1e6   :  { %1274 = shalt.err (!%p1271_p0)
}
 0x1e7   :  { %s1275_s25 = scalar_lea.hbm %s1473_s3, 2048 }
 0x1e8   :  { %p1276_p1 = scmp.ne.s32.totalorder %s1473_s3, %s1275_s25  ;;  %p1279_p2 = scmp.lt.u32.totalorder %s1275_s25, %s1473_s3 }
 0x1ea   :  { %p1281_p3 = pnand %p1279_p2, %p1276_p1 }
 0x1ec   :  { %1284 = shalt.err (!%p1281_p3)
}
 0x1ed   :  { %s1298_s30 = smov 1024   ;;  %s1299_s4 = smov 64  }
 0x1ee   :  { %1133 = dma.vmem_to_hbm [thread:$0]  %s1128_s21, 2048, %s1473_s3, [#allocation5], %s1298_s30, %s1298_s30, %s1299_s4  }
 0x1ef   :  { %1289 = dma.done.wait [#allocation5], 2048  }
 0x1f0   :  { %1290 = vsyncadd [#allocation5], 4294965248 }
 0x1f1   :  { %1137 = vsyncpa [#allocation4], 1 }
 0x1f2   :  { %1138 = vsyncpa [#allocation7], 1 }
 0x1f3   :  { %1139 = vsyncpa [#allocation5], 1 }

</bundles_post_ra>
